<compile_context>
chip_gen: v5e
topology: v5e:2x2
jax: 0.10.0
libtpu: 0.0.40
codegen_flags: <defaults>
</compile_context>

<pallas_src>
import jax
import jax.numpy as jnp
from jax.experimental import pallas as pl
from jax.experimental.pallas import tpu as pltpu

HIDDEN_SHAPE_BODY = 64
HIDDEN_SHAPE_BODY_OUT = 64
HIDDEN_SHAPE_POLICY = 32
HIDDEN_SHAPE_VALUE = 32

LANE = 128      # TPU lane width; packed weights/outputs are padded to this.
SUBLANE = 8     # sublane multiple for batch-tile rounding.


def _round_up(n, m):
    return ((n + m - 1) // m) * m


def _choose_tb(batch):
    """Batch-tile size.

    batch < 256  : one tile covering the whole (sublane-rounded) batch.
    batch >= 256 : aim for ~8 grid steps (keeps >=2 steps so both v7x
                   TensorCores get work), tiles in [256, 2048] rows.  2048
                   bf16 rows keep the double-buffered working set ~1.5 MiB,
                   well inside v5e's 16 MiB scoped-VMEM default.
    """
    if batch < 256:
        return _round_up(max(batch, 1), SUBLANE)
    return min(2048, _round_up(pl.cdiv(batch, 8), 256))


def _pvfc_kernel(x_ref, w_ref, b_ref, out_ref):
    """Fused body + (policy|value) heads on one (TB, num_inputs) batch tile.

    x_ref   : (TB, num_inputs)  bf16 input features (true feature width)
    w_ref   : (4, 128, 128)     packed, zero-padded bf16 weights (VMEM-resident)
    b_ref   : (4, 128)          packed, zero-padded f32 biases   (VMEM-resident)
    out_ref : (TB, 128)         lane-dense bf16 output: [policy | value | zero pad]
    """
    nin = x_ref.shape[1]
    x = x_ref[...]                                       # (TB, nin) bf16

    # body: Linear -> ReLU -> Linear      (f32 accumulation, bf16 operands)
    w0 = w_ref[0, :nin, :]                               # static slice: free
    h = jnp.dot(x, w0, preferred_element_type=jnp.float32) + b_ref[0:1, :]
    h = jnp.maximum(h, 0.0).astype(jnp.bfloat16)
    body = jnp.dot(h, w_ref[1], preferred_element_type=jnp.float32) + b_ref[1:2, :]
    body = body.astype(jnp.bfloat16)                     # no ReLU on body (matches module)

    # fused heads hidden layer: ReLU(body @ [w_p1 | w_v1] + [b_p1 | b_v1])
    hid = jnp.dot(body, w_ref[2], preferred_element_type=jnp.float32) + b_ref[2:3, :]
    hid = jnp.maximum(hid, 0.0).astype(jnp.bfloat16)

    # fused heads output layer: hid @ blockdiag(w_p2, w_v2) + [b_p2 | b_v2]
    out = jnp.dot(hid, w_ref[3], preferred_element_type=jnp.float32) + b_ref[3:4, :]

    out_ref[...] = out.astype(out_ref.dtype)


def _pack_params(params, num_inputs, num_actions):
    """Pack the 12 weight/bias arrays into one bf16 (4,128,128) weight slab and
    one f32 (4,128) bias slab, with the two heads fused (concatenated hidden
    layer, block-diagonal output layer).  Unused lanes stay exactly zero."""
    (w_b1, b_b1, w_b2, b_b2,
     w_p1, b_p1, w_p2, b_p2,
     w_v1, b_v1, w_v2, b_v2) = params

    assert num_inputs <= LANE, "packed layout assumes num_inputs <= 128"
    assert num_actions + 1 <= LANE, "packed layout assumes num_actions+1 <= 128"
    hp, hv = HIDDEN_SHAPE_POLICY, HIDDEN_SHAPE_VALUE

    W = jnp.zeros((4, LANE, LANE), jnp.float32)
    B = jnp.zeros((4, LANE), jnp.float32)

    # layer 0: body Linear(num_inputs -> 64)
    W = W.at[0, :num_inputs, :HIDDEN_SHAPE_BODY].set(w_b1)
    B = B.at[0, :HIDDEN_SHAPE_BODY].set(b_b1[0])
    # layer 1: body Linear(64 -> 64)
    W = W.at[1, :HIDDEN_SHAPE_BODY, :HIDDEN_SHAPE_BODY_OUT].set(w_b2)
    B = B.at[1, :HIDDEN_SHAPE_BODY_OUT].set(b_b2[0])
    # layer 2: fused head hidden  [w_p1 | w_v1]  (64 -> 32+32)
    W = W.at[2, :HIDDEN_SHAPE_BODY_OUT, :hp].set(w_p1)
    W = W.at[2, :HIDDEN_SHAPE_BODY_OUT, hp:hp + hv].set(w_v1)
    B = B.at[2, :hp].set(b_p1[0])
    B = B.at[2, hp:hp + hv].set(b_v1[0])
    # layer 3: fused head output  blockdiag(w_p2, w_v2)  (32+32 -> num_actions+1)
    W = W.at[3, :hp, :num_actions].set(w_p2)
    W = W.at[3, hp:hp + hv, num_actions:num_actions + 1].set(w_v2)
    B = B.at[3, :num_actions].set(b_p2[0])
    B = B.at[3, num_actions:num_actions + 1].set(b_v2[0])
    return W.astype(jnp.bfloat16), B


@jax.jit
def policy_value_fc_forward(x, params):
    """Forward pass of PolicyValueFC. x: (B, num_inputs) -> (policy, value) in f32."""
    batch, num_inputs = x.shape
    num_actions = params[6].shape[1]            # w_p2: (32, num_actions)

    w_packed, b_packed = _pack_params(params, num_inputs, num_actions)
    x_bf16 = x.astype(jnp.bfloat16)             # boundary cast; fuses upstream in a real pipeline

    tb = _choose_tb(batch)
    num_tiles = pl.cdiv(batch, tb)
    b_pad = num_tiles * tb                      # output rows (>= batch); extra rows are garbage

    flops = 2 * b_pad * (num_inputs * HIDDEN_SHAPE_BODY
                         + HIDDEN_SHAPE_BODY * HIDDEN_SHAPE_BODY_OUT
                         + HIDDEN_SHAPE_BODY_OUT * (HIDDEN_SHAPE_POLICY + HIDDEN_SHAPE_VALUE)
                         + (HIDDEN_SHAPE_POLICY + HIDDEN_SHAPE_VALUE) * (num_actions + 1))
    bytes_accessed = (batch * num_inputs * 2        # bf16 x read
                      + b_pad * LANE * 2            # bf16 output slab write
                      + w_packed.size * 2           # bf16 weights (fetched once)
                      + b_packed.size * 4)          # f32 biases

    out = pl.pallas_call(
        _pvfc_kernel,
        out_shape=jax.ShapeDtypeStruct((b_pad, LANE), jnp.bfloat16),
        grid=(num_tiles,),
        in_specs=[
            # x tile at true feature width; last block may be ragged (garbage
            # rows only affect their own output rows, sliced off below).
            pl.BlockSpec((tb, num_inputs), lambda i: (i, 0)),
            # Resident packed weights/biases: constant index_map, single buffer.
            pl.BlockSpec((4, LANE, LANE), lambda i: (0, 0, 0),
                         pipeline_mode=pl.Buffered(1)),
            pl.BlockSpec((4, LANE), lambda i: (0, 0),
                         pipeline_mode=pl.Buffered(1)),
        ],
        out_specs=pl.BlockSpec((tb, LANE), lambda i: (i, 0)),   # lane-dense bf16 slab
        compiler_params=pltpu.CompilerParams(
            dimension_semantics=("parallel",)),                 # shards batch across v7x TCs
        cost_estimate=pl.CostEstimate(
            flops=flops, transcendentals=0, bytes_accessed=bytes_accessed),
    )(x_bf16, w_packed, b_packed)

    policy = out[:batch, :num_actions].astype(jnp.float32)
    value = out[:batch, num_actions:num_actions + 1].astype(jnp.float32)
    return policy, value


def init_params(key, num_inputs, num_actions):
    """PyTorch-Linear-style init (uniform +/- 1/sqrt(fan_in)).
    Weights stored as (in, out), biases as (1, out)."""
    dims = [
        (num_inputs, HIDDEN_SHAPE_BODY),               # body[0]
        (HIDDEN_SHAPE_BODY, HIDDEN_SHAPE_BODY_OUT),    # body[2]
        (HIDDEN_SHAPE_BODY_OUT, HIDDEN_SHAPE_POLICY),  # policy[0]
        (HIDDEN_SHAPE_POLICY, num_actions),            # policy[2]
        (HIDDEN_SHAPE_BODY_OUT, HIDDEN_SHAPE_VALUE),   # value[0]
        (HIDDEN_SHAPE_VALUE, 1),                       # value[2]
    ]
    params = []
    for fan_in, fan_out in dims:
        key, kw, kb = jax.random.split(key, 3)
        bound = 1.0 / jnp.sqrt(jnp.float32(fan_in))
        w = jax.random.uniform(kw, (fan_in, fan_out), jnp.float32, -bound, bound)
        b = jax.random.uniform(kb, (1, fan_out), jnp.float32, -bound, bound)
        params.extend([w, b])
    return tuple(params)


def reference_forward(x, params):
    (w_b1, b_b1, w_b2, b_b2,
     w_p1, b_p1, w_p2, b_p2,
     w_v1, b_v1, w_v2, b_v2) = params
    h = jnp.maximum(x @ w_b1 + b_b1, 0.0)
    body = h @ w_b2 + b_b2
    p = jnp.maximum(body @ w_p1 + b_p1, 0.0)
    policy = p @ w_p2 + b_p2
    v = jnp.maximum(body @ w_v1 + b_v1, 0.0)
    value = v @ w_v2 + b_v2
    return policy, value


if __name__ == "__main__":
    B = 8
    NUM_INPUTS = 32
    NUM_ACTIONS = 5

    key = jax.random.PRNGKey(0)
    key, kx = jax.random.split(key)
    x = jax.random.normal(kx, (B, NUM_INPUTS), jnp.float32)
    params = init_params(key, NUM_INPUTS, NUM_ACTIONS)

    policy, value = policy_value_fc_forward(x, params)
    policy = jax.block_until_ready(policy)
    value = jax.block_until_ready(value)

    # sanity check against pure-JAX f32 reference (bf16 operands => 1e-2 tol)
    ref_policy, ref_value = reference_forward(x, params)
    assert policy.shape == (B, NUM_ACTIONS) and value.shape == (B, 1)
    assert jnp.allclose(policy, ref_policy, atol=1e-2, rtol=1e-2)
    assert jnp.allclose(value, ref_value, atol=1e-2, rtol=1e-2)

    print("KERNEL_OK")
</pallas_src>

<mosaic_0001>
module attributes {stable_mosaic.version = 11 : i64} {
  func.func @_pvfc_kernel(%arg0: i32, %arg1: memref<8x32xbf16, #tpu.memory_space<vmem>>, %arg2: memref<4x128x128xbf16, #tpu.memory_space<vmem>>, %arg3: memref<4x128xf32, #tpu.memory_space<vmem>>, %arg4: memref<8x128xbf16, #tpu.memory_space<vmem>>) attributes {dimension_semantics = [#tpu.dimension_semantics<parallel>], iteration_bounds = array<i64: 1>, scalar_prefetch = 0 : i64, scratch_operands = 0 : i64, tpu.core_type = #tpu.core_type<tc>, window_params = [{transform_indices = @transform_0, window_bounds = array<i64: 8, 32>}, {pipeline_mode = #tpu.pipeline_mode<synchronous>, transform_indices = @transform_1, window_bounds = array<i64: 4, 128, 128>}, {pipeline_mode = #tpu.pipeline_mode<synchronous>, transform_indices = @transform_2, window_bounds = array<i64: 4, 128>}, {transform_indices = @transform_3, window_bounds = array<i64: 8, 128>}]} {
    %c0 = arith.constant 0 : index
    %c0_0 = arith.constant 0 : index
    %0 = vector.load %arg1[%c0, %c0_0] : memref<8x32xbf16, #tpu.memory_space<vmem>>, vector<8x32xbf16>
    %c0_1 = arith.constant 0 : index
    %c0_2 = arith.constant 0 : index
    %c0_3 = arith.constant 0 : index
    %1 = vector.load %arg2[%c0_1, %c0_2, %c0_3] : memref<4x128x128xbf16, #tpu.memory_space<vmem>>, vector<1x32x128xbf16>
    %2 = vector.shape_cast %1 : vector<1x32x128xbf16> to vector<32x128xbf16>
    %cst = arith.constant dense<0.000000e+00> : vector<8x128xf32>
    %3 = tpu.matmul %0, %2, %cst {dimension_numbers = #tpu.dot_dimension_numbers<[1], [0], [0], [1], [0, 0, 1, 1], [], []>} : vector<8x32xbf16>, vector<32x128xbf16>, vector<8x128xf32> -> vector<8x128xf32>
    %c0_4 = arith.constant 0 : index
    %c0_5 = arith.constant 0 : index
    %4 = vector.load %arg3[%c0_4, %c0_5] : memref<4x128xf32, #tpu.memory_space<vmem>>, vector<1x128xf32>
    %5 = vector.broadcast %4 : vector<1x128xf32> to vector<8x128xf32>
    %6 = arith.addf %3, %5 : vector<8x128xf32>
    %cst_6 = arith.constant 0.000000e+00 : f32
    %7 = vector.broadcast %cst_6 : f32 to vector<8x128xf32>
    %8 = arith.maximumf %6, %7 : vector<8x128xf32>
    %9 = arith.truncf %8 : vector<8x128xf32> to vector<8x128xbf16>
    %c1 = arith.constant 1 : index
    %c0_7 = arith.constant 0 : index
    %c0_8 = arith.constant 0 : index
    %10 = vector.load %arg2[%c1, %c0_7, %c0_8] : memref<4x128x128xbf16, #tpu.memory_space<vmem>>, vector<1x128x128xbf16>
    %11 = vector.shape_cast %10 : vector<1x128x128xbf16> to vector<128x128xbf16>
    %cst_9 = arith.constant dense<0.000000e+00> : vector<8x128xf32>
    %12 = tpu.matmul %9, %11, %cst_9 {dimension_numbers = #tpu.dot_dimension_numbers<[1], [0], [0], [1], [0, 0, 1, 1], [], []>} : vector<8x128xbf16>, vector<128x128xbf16>, vector<8x128xf32> -> vector<8x128xf32>
    %c1_10 = arith.constant 1 : index
    %c0_11 = arith.constant 0 : index
    %13 = vector.load %arg3[%c1_10, %c0_11] : memref<4x128xf32, #tpu.memory_space<vmem>>, vector<1x128xf32>
    %14 = vector.broadcast %13 : vector<1x128xf32> to vector<8x128xf32>
    %15 = arith.addf %12, %14 : vector<8x128xf32>
    %16 = arith.truncf %15 : vector<8x128xf32> to vector<8x128xbf16>
    %c2 = arith.constant 2 : index
    %c0_12 = arith.constant 0 : index
    %c0_13 = arith.constant 0 : index
    %17 = vector.load %arg2[%c2, %c0_12, %c0_13] : memref<4x128x128xbf16, #tpu.memory_space<vmem>>, vector<1x128x128xbf16>
    %18 = vector.shape_cast %17 : vector<1x128x128xbf16> to vector<128x128xbf16>
    %cst_14 = arith.constant dense<0.000000e+00> : vector<8x128xf32>
    %19 = tpu.matmul %16, %18, %cst_14 {dimension_numbers = #tpu.dot_dimension_numbers<[1], [0], [0], [1], [0, 0, 1, 1], [], []>} : vector<8x128xbf16>, vector<128x128xbf16>, vector<8x128xf32> -> vector<8x128xf32>
    %c2_15 = arith.constant 2 : index
    %c0_16 = arith.constant 0 : index
    %20 = vector.load %arg3[%c2_15, %c0_16] : memref<4x128xf32, #tpu.memory_space<vmem>>, vector<1x128xf32>
    %21 = vector.broadcast %20 : vector<1x128xf32> to vector<8x128xf32>
    %22 = arith.addf %19, %21 : vector<8x128xf32>
    %cst_17 = arith.constant 0.000000e+00 : f32
    %23 = vector.broadcast %cst_17 : f32 to vector<8x128xf32>
    %24 = arith.maximumf %22, %23 : vector<8x128xf32>
    %25 = arith.truncf %24 : vector<8x128xf32> to vector<8x128xbf16>
    %c3 = arith.constant 3 : index
    %c0_18 = arith.constant 0 : index
    %c0_19 = arith.constant 0 : index
    %26 = vector.load %arg2[%c3, %c0_18, %c0_19] : memref<4x128x128xbf16, #tpu.memory_space<vmem>>, vector<1x128x128xbf16>
    %27 = vector.shape_cast %26 : vector<1x128x128xbf16> to vector<128x128xbf16>
    %cst_20 = arith.constant dense<0.000000e+00> : vector<8x128xf32>
    %28 = tpu.matmul %25, %27, %cst_20 {dimension_numbers = #tpu.dot_dimension_numbers<[1], [0], [0], [1], [0, 0, 1, 1], [], []>} : vector<8x128xbf16>, vector<128x128xbf16>, vector<8x128xf32> -> vector<8x128xf32>
    %c3_21 = arith.constant 3 : index
    %c0_22 = arith.constant 0 : index
    %29 = vector.load %arg3[%c3_21, %c0_22] : memref<4x128xf32, #tpu.memory_space<vmem>>, vector<1x128xf32>
    %30 = vector.broadcast %29 : vector<1x128xf32> to vector<8x128xf32>
    %31 = arith.addf %28, %30 : vector<8x128xf32>
    %32 = arith.truncf %31 : vector<8x128xf32> to vector<8x128xbf16>
    %c0_23 = arith.constant 0 : index
    %c0_24 = arith.constant 0 : index
    %33 = vector.load %arg4[%c0_23, %c0_24] : memref<8x128xbf16, #tpu.memory_space<vmem>>, vector<8x128xbf16>
    tpu.vector_store %arg4[%c0_23, %c0_24], %32 {strides = array<i32>} : memref<8x128xbf16, #tpu.memory_space<vmem>>, vector<8x128xbf16>,
    return
  }
  func.func @transform_0(%arg0: i32) -> (i32, i32) {
    %c0_i32 = arith.constant 0 : i32
    %c0_i32_0 = arith.constant 0 : i32
    return %arg0, %c0_i32 : i32, i32
  }
  func.func @transform_1(%arg0: i32) -> (i32, i32, i32) {
    %c0_i32 = arith.constant 0 : i32
    %c0_i32_0 = arith.constant 0 : i32
    %c0_i32_1 = arith.constant 0 : i32
    %c0_i32_2 = arith.constant 0 : i32
    return %c0_i32, %c0_i32_0, %c0_i32_1 : i32, i32, i32
  }
  func.func @transform_2(%arg0: i32) -> (i32, i32) {
    %c0_i32 = arith.constant 0 : i32
    %c0_i32_0 = arith.constant 0 : i32
    %c0_i32_1 = arith.constant 0 : i32
    return %c0_i32, %c0_i32_0 : i32, i32
  }
  func.func @transform_3(%arg0: i32) -> (i32, i32) {
    %c0_i32 = arith.constant 0 : i32
    %c0_i32_0 = arith.constant 0 : i32
    return %arg0, %c0_i32 : i32, i32
  }
}

</mosaic_0001>

<bundles_post_ra>
// kernel: policy_value_fc_forward.1
= control target key start
LH: loop header
LB: loop body
LE: loop exit
PB: predicated region body
PF: predicated region fallthrough
CT: control target
= control target key end

     0   :  { %vm34_vm0 = vcmask 261120   ;;  %s601_s1 = inlined_call_operand.vmem [shape: bf16[4,128,128], index: 1, kind: input, shape index: {}]   ;;  %s602_s2 = inlined_call_operand.vmem [shape: f32[4,128], index: 2, kind: input, shape index: {}]   ;;  %s603_s0 = inlined_call_operand.vmem [shape: bf16[8,32], index: 0, kind: input, shape index: {}]   ;;  %s604_s3 = inlined_call_operand.vmem [shape: bf16[8,128], index: 3, kind: output, shape index: {}]  }
   0x1   :  { %v456_v0 = vld [vmem:[%s601_s1 + $0x8] sm:$0xff]  ;;  %v464_v1 = vld [vmem:[%s601_s1 + $0x78] sm:$0xff]  ;;  %v455_v2 = vld [vmem:[%s601_s1] sm:$0xff] }
   0x2   :  { %44 = vmatpush.bf16.msra.mxu0 %v456_v0  ;;  %120 = vmatpush.bf16.msra.mxu1 %v464_v1  ;;  %v463_v3 = vld [vmem:[%s601_s1 + $0x70] sm:$0xff]  ;;  %v15_v4 = vld [vmem:[%s603_s0] sm:$0xf]  ;;  %v462_v5 = vld [vmem:[%s601_s1 + $0x68] sm:$0xff] }
   0x3   :  { %v461_v6 = vld [vmem:[%s601_s1 + $0x60] sm:$0xff]  ;;  %v460_v7 = vld [vmem:[%s601_s1 + $0x58] sm:$0xff]  ;;  %v459_v8 = vld [vmem:[%s601_s1 + $0x50] sm:$0xff] }
   0x4   :  { %v458_v9 = vld [vmem:[%s601_s1 + $0x48] sm:$0xff]  ;;  %v457_v10 = vld [vmem:[%s601_s1 + $0x40] sm:$0xff]  ;;  %v472_v11 = vld [vmem:[%s601_s1 + $0xb8] sm:$0xff] }
   0x5   :  { %201 = vmatpush.bf16.msra.mxu2 %v472_v11  ;;  %v471_v12 = vld [vmem:[%s601_s1 + $0xb0] sm:$0xff]  ;;  %v470_v13 = vld [vmem:[%s601_s1 + $0xa8] sm:$0xff]  ;;  %v469_v14 = vld [vmem:[%s601_s1 + $0xa0] sm:$0xff] }
   0x6   :  { %45 = vmatpush.bf16.msra.mxu0 %v455_v2  ;;  %121 = vmatpush.bf16.msra.mxu1 %v463_v3  ;;  %v468_v15 = vld [vmem:[%s601_s1 + $0x98] sm:$0xff]  ;;  %v467_v16 = vld [vmem:[%s601_s1 + $0x90] sm:$0xff]  ;;  %v481_v17 = vld [vmem:[%s602_s2] ss:$0 sm:$0xff] }
   0x7   :  { %v466_v18 = vld [vmem:[%s601_s1 + $0x88] sm:$0xff]  ;;  %v465_v24 = vld [vmem:[%s601_s1 + $0x80] sm:$0xff]  ;;  %v480_v25 = vld [vmem:[%s601_s1 + $0xf8] sm:$0xff] }
   0x8   :  { %283 = vmatpush.bf16.msra.mxu3 %v480_v25  ;;  %v479_v26 = vld [vmem:[%s601_s1 + $0xf0] sm:$0xff]  ;;  %v478_v27 = vld [vmem:[%s601_s1 + $0xe8] sm:$0xff]  ;;  %v477_v28 = vld [vmem:[%s601_s1 + $0xe0] sm:$0xff] }
   0x9   :  { %310 = vmatmul.msk.bf16.vlgmr.msra.gmra.mxu0 %vm34_vm0, %v15_v4  ;;  %202 = vmatpush.bf16.msra.mxu2 %v471_v12  ;;  %v476_v29 = vld [vmem:[%s601_s1 + $0xd8] sm:$0xff]  ;;  %v475_v30 = vld [vmem:[%s601_s1 + $0xd0] sm:$0xff]  ;;  %v482_v31 = vld [vmem:[%s602_s2 + $0x1] ss:$0 sm:$0xff] }
   0xa   :  { %122 = vmatpush.bf16.msra.mxu1 %v462_v5  ;;  %v474_v36 = vld [vmem:[%s601_s1 + $0xc8] sm:$0xff]  ;;  %v473_v37 = vld [vmem:[%s601_s1 + $0xc0] sm:$0xff] }
   0xb   :  { %v483_v38 = vld [vmem:[%s602_s2 + $0x2] ss:$0 sm:$0xff]  ;;  %v484_v44 = vld [vmem:[%s602_s2 + $0x3] ss:$0 sm:$0xff] }
   0xc   :  { %284 = vmatpush.bf16.msra.mxu3 %v479_v26 }
   0xd   :  { %203 = vmatpush.bf16.msra.mxu2 %v470_v13 }
   0xe   :  { %123 = vmatpush.bf16.msra.mxu1 %v461_v6 }
  0x10   :  { %285 = vmatpush.bf16.msra.mxu3 %v478_v27 }
  0x11   :  { %204 = vmatpush.bf16.msra.mxu2 %v469_v14 }
  0x12   :  { %124 = vmatpush.bf16.msra.mxu1 %v460_v7 }
  0x14   :  { %286 = vmatpush.bf16.msra.mxu3 %v477_v28 }
  0x15   :  { %205 = vmatpush.bf16.msra.mxu2 %v468_v15 }
  0x16   :  { %125 = vmatpush.bf16.msra.mxu1 %v459_v8 }
  0x18   :  { %287 = vmatpush.bf16.msra.mxu3 %v476_v29 }
  0x19   :  { %206 = vmatpush.bf16.msra.mxu2 %v467_v16 }
  0x1a   :  { %126 = vmatpush.bf16.msra.mxu1 %v458_v9 }
  0x1c   :  { %288 = vmatpush.bf16.msra.mxu3 %v475_v30 }
  0x1d   :  { %207 = vmatpush.bf16.msra.mxu2 %v466_v18 }
  0x1e   :  { %127 = vmatpush.bf16.msra.mxu1 %v457_v10 }
  0x20   :  { %289 = vmatpush.bf16.msra.mxu3 %v474_v36 }
  0x21   :  { %208 = vmatpush.bf16.msra.mxu2 %v465_v24 }
  0x24   :  { %290 = vmatpush.bf16.msra.mxu3 %v473_v37 }
  0x86   :  { %v47_v19 = vpop.f32.mrf.mxu0 }
  0x87   :  { %v48_v20 = vadd.f32 %v481_v17, %v47_v19 }
  0x89   :  { %v51_v21 = vmax.f32 %v48_v20, 0.0 }
  0x8b   :  { %v52_v22 = vpack.c.bf16 %v51_v21, %v51_v21 }
  0x8d   :  { %128 = vmatmul.bf16.vlgmr.msra.gmra.mxu1 %v52_v22 }
  0x8e   :  { %v49_v23 = vpop.f32.mrf.mxu0 }
 0x10a   :  { %v129_v32 = vpop.f32.mrf.mxu1 }
 0x10b   :  { %v130_v33 = vadd.f32 %v482_v31, %v129_v32 }
 0x10d   :  { %v133_v34 = vpack.c.bf16 %v130_v33, %v130_v33 }
 0x10f   :  { %209 = vmatmul.bf16.vlgmr.msra.gmra.mxu2 %v133_v34 }
 0x112   :  { %v131_v35 = vpop.f32.mrf.mxu1 }
 0x192   :  { %v210_v39 = vpop.f32.mrf.mxu2 }
 0x193   :  { %v211_v40 = vadd.f32 %v483_v38, %v210_v39 }
 0x195   :  { %v214_v41 = vmax.f32 %v211_v40, 0.0 }
 0x197   :  { %v215_v42 = vpack.c.bf16 %v214_v41, %v214_v41 }
 0x199   :  { %291 = vmatmul.bf16.vlgmr.msra.gmra.mxu3 %v215_v42 }
 0x19a   :  { %v212_v43 = vpop.f32.mrf.mxu2 }
 0x21c   :  { %v292_v45 = vpop.f32.mrf.mxu3 }
 0x21d   :  { %v293_v46 = vadd.f32 %v484_v44, %v292_v45 }
 0x21f   :  { %v296_v47 = vpack.c.bf16 %v293_v46, %v293_v46 }
 0x221   :  { %297 = vst [vmem:[%s604_s3] sm:$0xf] %v296_v47 }
 0x224   :  { %v294_v48 = vpop.f32.mrf.mxu3 }

</bundles_post_ra>
